<compile_context>
chip_gen: v6e
topology: v6e:2x2x1
jax: 0.10.0
libtpu: 0.0.40
codegen_flags: <defaults>
</compile_context>

<pallas_src>
import jax
import jax.numpy as jnp
from jax.experimental import pallas as pl
from jax.experimental.pallas import tpu as pltpu

# ----- problem sizes (small, consistent with the forward pass) --------------
B_Q = 2                      # actual number of questions
B = 8                        # padded query batch (>= 8 f32 sublanes)
H = 128                      # encoder hidden size (stand-in for 768)
D = 128                      # DPR embedding dim (stand-in for 768)
N_DOCS = 200                 # number of context documents
N_PAD = ((N_DOCS + 127) // 128) * 128       # 256: lane-aligned corpus width
K = 5                        # n_docs (top-k)
K_PAD = 128                  # lane-dense top-k output width
NEG = -1e30                  # "minus infinity" sentinel (finite, f32-safe)


def dpr_pooler_kernel(qh_ref, w_ref, b_ref, out_ref):
    """DPR pooler head: tanh(cls_hidden @ W_pool + b_pool)."""
    out_ref[...] = jnp.tanh(
        jnp.dot(qh_ref[...], w_ref[...], preferred_element_type=jnp.float32)
        + b_ref[...])


def retrieve_topk_kernel(pooled_ref, ctx_ref, boost_ref,
                         topk_s_ref, topk_i_ref):
    """scores = pooled @ ctx_T; keyword boost; top-K over the doc axis."""
    # ctx is pre-transposed [D, N_PAD] -> no in-kernel transpose; docs on lanes.
    p = pooled_ref[...].astype(ctx_ref.dtype)      # match MXU input dtype
    s = jnp.dot(p, ctx_ref[...], preferred_element_type=jnp.float32)
    s = s * boost_ref[...]                          # keyword boost (broadcast)

    col = jax.lax.broadcasted_iota(jnp.int32, s.shape, 1)   # global doc index
    s = jnp.where(col < N_DOCS, s, NEG)                     # mask padded cols

    # ---- top-K selection (K small & static -> unrolled) --------------------
    out_lane = jax.lax.broadcasted_iota(jnp.int32, (B, K_PAD), 1)
    top_s = jnp.full((B, K_PAD), NEG, dtype=jnp.float32)
    top_i = jnp.zeros((B, K_PAD), dtype=jnp.int32)
    work = s
    for k in range(K):
        m = jnp.max(work, axis=1, keepdims=True)                       # [B,1]
        # tie-break on smallest doc index == torch.topk first-occurrence
        idx = jnp.min(jnp.where(work == m, col, jnp.int32(N_PAD)),
                      axis=1, keepdims=True)                           # [B,1]
        top_s = jnp.where(out_lane == k, m, top_s)     # register accumulate
        top_i = jnp.where(out_lane == k, idx, top_i)
        work = jnp.where((work == m) & (col == idx), NEG, work)

    # lane-dense full-slab stores (unmasked vst); sliced to [B_Q, K] outside.
    topk_s_ref[...] = top_s
    topk_i_ref[...] = top_i


def rag_retrieve(q_hidden, w_pool, b_pool, ctx_emb, boost,
                 *, ctx_dtype=jnp.float32):
    """Pallas wrapper for RAG.retrieve()'s tensor math.

    q_hidden [B_Q, H] f32, w_pool [H, D], b_pool [1, D],
    ctx_emb [N_DOCS, D], boost [1, N_DOCS] (1.0 / 1.5 per doc, from
    questions[0] keyword match, as in the original module).
    `ctx_dtype`: corpus storage dtype — f32 here for exact torch.topk
    semantics; at real scale use bf16 (int8 on v5e/v6e, fp8 on v7x).
    Returns (top_k_scores [B_Q, K] f32, top_k_indices [B_Q, K] i32).
    """
    bq = q_hidden.shape[0]
    n = ctx_emb.shape[0]
    assert n >= K, "retrieve() precondition: need at least n_docs documents"

    vmem = pl.BlockSpec(memory_space=pltpu.MemorySpace.VMEM)

    # pad batch to a full sublane group; pad + pre-transpose the doc corpus
    # (at real scale the corpus would simply be stored as [D, N] bf16 in HBM).
    q_pad = jnp.zeros((B, H), q_hidden.dtype).at[:bq].set(q_hidden)
    ctx_t = jnp.zeros((D, N_PAD), ctx_dtype).at[:, :n].set(
        ctx_emb.T.astype(ctx_dtype))
    boost_p = jnp.ones((1, N_PAD), jnp.float32).at[:, :n].set(
        boost.reshape(1, n).astype(jnp.float32))

    # ---- kernel 1: DPR pooler (hoisted out of the retrieval kernel) --------
    pooled = pl.pallas_call(
        dpr_pooler_kernel,
        out_shape=jax.ShapeDtypeStruct((B, D), jnp.float32),
        in_specs=[vmem, vmem, vmem],
        out_specs=vmem,
    )(q_pad, w_pool, b_pool)

    # ---- kernel 2: retrieval scores + top-K, single invocation (no grid) ---
    topk_s, topk_i = pl.pallas_call(
        retrieve_topk_kernel,
        out_shape=(jax.ShapeDtypeStruct((B, K_PAD), jnp.float32),
                   jax.ShapeDtypeStruct((B, K_PAD), jnp.int32)),
        in_specs=[vmem, vmem, vmem],
        out_specs=(vmem, vmem),
    )(pooled, ctx_t, boost_p)

    return topk_s[:bq, :K], topk_i[:bq, :K]


# TODO(synk): LLaMA generation, tokenization, prompt building, LRU/file cache
# and adaptive streaming delays from RAG.generate_stream are host-side /
# autoregressive text processing with no clean Pallas equivalent; only the
# retrieve() tensor math is kerneled.


if __name__ == "__main__":
    key = jax.random.PRNGKey(0)
    k1, k2, k3 = jax.random.split(key, 3)

    # deterministic synthetic inputs / parameters
    q_hidden = jax.random.normal(k1, (B_Q, H), dtype=jnp.float32)
    w_pool = jax.random.normal(k2, (H, D), dtype=jnp.float32) * 0.02
    b_pool = jnp.zeros((1, D), dtype=jnp.float32)
    ctx_emb = jax.random.normal(k3, (N_DOCS, D), dtype=jnp.float32)

    # host-side glue: keyword boost derived from questions[0], exactly as in
    # RAG.retrieve (the original applies questions[0]'s boost to all rows;
    # a per-question boost would need a [B, N] boost matrix).
    questions = ["how does the rag model retrieve documents?",
                 "explain the training loop"]
    doc_ids = [f"src/models/{name}.py" for name in
               ["vit", "bert", "lora", "pix2pix", "ddpm", "rag"]] + \
              [f"doc_{i}" for i in range(6, N_DOCS)]
    model_keywords = {"vit": ["vit"], "bert": ["bert"], "lora": ["lora"],
                      "pix2pix": ["pix2pix"], "ddpm": ["ddpm"], "rag": ["rag"]}
    target_model = None
    for model, kws in model_keywords.items():
        if any(kw in questions[0].lower() for kw in kws):
            target_model = model
            break
    boost_host = [1.5 if (target_model and
                          (f"models/{target_model}.py" in d or
                           f"train_{target_model}.py" in d)) else 1.0
                  for d in doc_ids]
    boost = jnp.asarray(boost_host, dtype=jnp.float32).reshape(1, N_DOCS)

    topk_scores, topk_idx = rag_retrieve(q_hidden, w_pool, b_pool,
                                         ctx_emb, boost)
    jax.block_until_ready((topk_scores, topk_idx))

    # pure-JAX reference check of the kernel math
    pooled_ref = jnp.tanh(q_hidden @ w_pool + b_pool)
    scores_ref = (pooled_ref @ ctx_emb.T) * boost
    tk_s_ref, tk_i_ref = jax.lax.top_k(scores_ref, K)
    assert jnp.allclose(topk_scores, tk_s_ref, atol=1e-4, rtol=1e-4)
    assert jnp.array_equal(topk_idx, tk_i_ref)

    # retrieved_docs glue (string gather, host side) as in RAG.retrieve
    retrieved_docs = [[doc_ids[int(i)] for i in row] for row in topk_idx]
    _ = retrieved_docs  # answers would come from the (untranslatable) generator

    print("KERNEL_OK")
</pallas_src>

<mosaic_0001>
module attributes {stable_mosaic.version = 11 : i64} {
  func.func @dpr_pooler_kernel(%arg0: memref<8x128xf32, #tpu.memory_space<vmem>>, %arg1: memref<128x128xf32, #tpu.memory_space<vmem>>, %arg2: memref<1x128xf32, #tpu.memory_space<vmem>>, %arg3: memref<8x128xf32, #tpu.memory_space<vmem>>) attributes {dimension_semantics = [], scalar_prefetch = 0 : i64, scratch_operands = 0 : i64, tpu.core_type = #tpu.core_type<tc>} {
    %c0 = arith.constant 0 : index
    %c0_0 = arith.constant 0 : index
    %0 = vector.load %arg0[%c0, %c0_0] : memref<8x128xf32, #tpu.memory_space<vmem>>, vector<8x128xf32>
    %c0_1 = arith.constant 0 : index
    %c0_2 = arith.constant 0 : index
    %1 = vector.load %arg1[%c0_1, %c0_2] : memref<128x128xf32, #tpu.memory_space<vmem>>, vector<128x128xf32>
    %cst = arith.constant dense<0.000000e+00> : vector<8x128xf32>
    %2 = tpu.matmul %0, %1, %cst {dimension_numbers = #tpu.dot_dimension_numbers<[1], [0], [0], [1], [0, 0, 1, 1], [], []>} : vector<8x128xf32>, vector<128x128xf32>, vector<8x128xf32> -> vector<8x128xf32>
    %c0_3 = arith.constant 0 : index
    %c0_4 = arith.constant 0 : index
    %3 = vector.load %arg2[%c0_3, %c0_4] : memref<1x128xf32, #tpu.memory_space<vmem>>, vector<1x128xf32>
    %4 = vector.broadcast %3 : vector<1x128xf32> to vector<8x128xf32>
    %5 = arith.addf %2, %4 : vector<8x128xf32>
    %6 = math.tanh %5 : vector<8x128xf32>
    %c0_5 = arith.constant 0 : index
    %c0_6 = arith.constant 0 : index
    %7 = vector.load %arg3[%c0_5, %c0_6] : memref<8x128xf32, #tpu.memory_space<vmem>>, vector<8x128xf32>
    tpu.vector_store %arg3[%c0_5, %c0_6], %6 {strides = array<i32>} : memref<8x128xf32, #tpu.memory_space<vmem>>, vector<8x128xf32>,
    return
  }
}

</mosaic_0001>

<bundles_post_ra>
// kernel: tpu_custom_call.1
= control target key start
LH: loop header
LB: loop body
LE: loop exit
PB: predicated region body
PF: predicated region fallthrough
CT: control target
= control target key end

     0   :  { %8 = vsyncpa [#allocation3], 0  ;;  %s320_s0 = inlined_call_operand.hbm [shape: f32[8,128], index: 0, kind: input, shape index: {}]   ;;  %s321_s1 = inlined_call_operand.hbm [shape: f32[128,128], index: 1, kind: input, shape index: {}]   ;;  %s322_s2 = inlined_call_operand.vmem [shape: f32[1,128], index: 2, kind: input, shape index: {}]   ;;  %s323_s3 = inlined_call_operand.hbm [shape: f32[8,128], index: 3, kind: output, shape index: {}]  }
   0x1   :  { %9 = vsyncpa [#allocation6], 0 }
   0x2   :  { %10 = vsyncpa [#allocation4], 0  ;;  %s281_s12 = smov [#allocation2]   ;;  %s282_s14 = smov [#allocation5]  }
   0x3   :  { %s17_s13 = sshll.u32 %s281_s12, 4  ;;  %s26_s15 = sshll.u32 %s282_s14, 4  ;;  %s18_s13 = int_to_ptr.vmem [resolvable:$true] %s17_s13  ;;  %s27_s15 = int_to_ptr.vmem [resolvable:$true] %s26_s15 }
   0x4   :  { %s223_s16 = scalar_lea.vmem %s18_s13, 128  ;;  %p228_p1 = scmp.lt.s32.totalorder %s18_s13, %s18_s13 }
   0x5   :  { %p224_p0 = scmp.ne.s32.totalorder %s18_s13, %s223_s16  ;;  %p229_p2 = scmp.lt.s32.totalorder %s223_s16, %s223_s16 }
   0x7   :  { %p230_p3 = por %p229_p2, %p228_p1 }
   0x9   :  { %p231_p4 = pnand %p230_p3, %p224_p0 }
   0xb   :  { %234 = shalt.err (!%p231_p4)
}
   0xc   :  { %20 = dma.hbm_to_vmem [thread:$0]  %s320_s0, 128, %s18_s13, [#allocation3]  }
   0xd   :  { %s243_s19 = scalar_lea.vmem %s27_s15, 2048  ;;  %p248_p6 = scmp.lt.s32.totalorder %s27_s15, %s27_s15 }
   0xe   :  { %p244_p5 = scmp.ne.s32.totalorder %s27_s15, %s243_s19  ;;  %p249_p7 = scmp.lt.s32.totalorder %s243_s19, %s243_s19 }
  0x10   :  { %p250_p8 = por %p249_p7, %p248_p6 }
  0x12   :  { %p251_p9 = pnand %p250_p8, %p244_p5 }
  0x14   :  { %254 = shalt.err (!%p251_p9)
}
  0x15   :  { %s283_s20 = smov 128   ;;  %s284_s21 = smov 8  }
  0x16   :  { %32 = dma.hbm_to_vmem [thread:$0]  %s321_s1, 2048, %s27_s15, [#allocation6], %s283_s20, %s283_s20, %s284_s21  }
  0x17   :  { %275 = dma.done.wait [#allocation3], 128  }
  0x18   :  { %276 = vsyncadd [#allocation3], 4294967168 }
  0x19   :  { %277 = dma.done.wait [#allocation6], 2048  }
  0x1a   :  { %278 = vsyncadd [#allocation6], 4294965248  ;;  %v285_v0 = vmov 0.0   ;;  %vm286_vm0 = vmmov 0   ;;  %v57_v1 = vld [vmem:[#allocation5 + $0x78] sm:$0xff]  ;;  %v56_v2 = vld [vmem:[#allocation5 + $0x70] sm:$0xff] }
  0x1b   :  { %171 = vmatprep.subr.mxu0 %v285_v0  ;;  %203 = vmatprep.mubr.msk.f32.mxu0 %vm286_vm0, %v285_v0  ;;  %v55_v3 = vld [vmem:[#allocation5 + $0x68] sm:$0xff]  ;;  %v54_v4 = vld [vmem:[#allocation5 + $0x60] sm:$0xff]  ;;  %v53_v5 = vld [vmem:[#allocation5 + $0x58] sm:$0xff]  ;;  %s287_s24 = smov [#allocation7]  }
  0x1c   :  { %172 = vmatpush3.msra.mxu0 %v57_v1  ;;  %v52_v6 = vld [vmem:[#allocation5 + $0x50] sm:$0xff]  ;;  %v51_v7 = vld [vmem:[#allocation5 + $0x48] sm:$0xff]  ;;  %v50_v8 = vld [vmem:[#allocation5 + $0x40] sm:$0xff]  ;;  %s143_s25 = sshll.u32 %s287_s24, 4  ;;  %s144_s25 = int_to_ptr.vmem [resolvable:$true] %s143_s25 }
  0x1d   :  { %173 = vmatprep.subr.mxu0 %v285_v0  ;;  %v49_v9 = vld [vmem:[#allocation5 + $0x38] sm:$0xff]  ;;  %v48_v10 = vld [vmem:[#allocation5 + $0x30] sm:$0xff]  ;;  %v47_v11 = vld [vmem:[#allocation5 + $0x28] sm:$0xff]  ;;  %s255_s26 = scalar_lea.vmem %s144_s25, 128  ;;  %p260_p11 = scmp.lt.s32.totalorder %s144_s25, %s144_s25 }
  0x1e   :  { %174 = vmatpush3.msra.mxu0 %v56_v2  ;;  %v46_v12 = vld [vmem:[#allocation5 + $0x20] sm:$0xff]  ;;  %v45_v13 = vld [vmem:[#allocation5 + $0x18] sm:$0xff]  ;;  %v44_v14 = vld [vmem:[#allocation5 + $0x10] sm:$0xff]  ;;  %p256_p10 = scmp.ne.s32.totalorder %s144_s25, %s255_s26  ;;  %p261_p12 = scmp.lt.s32.totalorder %s255_s26, %s255_s26 }
  0x1f   :  { %175 = vmatprep.subr.mxu0 %v285_v0  ;;  %v43_v15 = vld [vmem:[#allocation5 + $0x8] sm:$0xff]  ;;  %v42_v16 = vld [vmem:[#allocation5] sm:$0xff]  ;;  %v41_v17 = vld [vmem:[#allocation2] sm:$0xff] }
  0x20   :  { %176 = vmatpush3.msra.mxu0 %v55_v3  ;;  %v153_v18 = vld [vmem:[%s322_s2] ss:$0 sm:$0xff]  ;;  %p262_p13 = por %p261_p12, %p260_p11 }
  0x21   :  { %177 = vmatprep.subr.mxu0 %v285_v0 }
  0x22   :  { %178 = vmatpush3.msra.mxu0 %v54_v4  ;;  %p263_p0 = pnand %p262_p13, %p256_p10 }
  0x23   :  { %179 = vmatprep.subr.mxu0 %v285_v0 }
  0x24   :  { %180 = vmatpush3.msra.mxu0 %v53_v5 }
  0x25   :  { %181 = vmatprep.subr.mxu0 %v285_v0 }
  0x26   :  { %182 = vmatpush3.msra.mxu0 %v52_v6 }
  0x27   :  { %183 = vmatprep.subr.mxu0 %v285_v0 }
  0x28   :  { %184 = vmatpush3.msra.mxu0 %v51_v7 }
  0x29   :  { %185 = vmatprep.subr.mxu0 %v285_v0 }
  0x2a   :  { %186 = vmatpush3.msra.mxu0 %v50_v8 }
  0x2b   :  { %187 = vmatprep.subr.mxu0 %v285_v0 }
  0x2c   :  { %188 = vmatpush3.msra.mxu0 %v49_v9 }
  0x2d   :  { %189 = vmatprep.subr.mxu0 %v285_v0 }
  0x2e   :  { %190 = vmatpush3.msra.mxu0 %v48_v10 }
  0x2f   :  { %191 = vmatprep.subr.mxu0 %v285_v0 }
  0x30   :  { %192 = vmatpush3.msra.mxu0 %v47_v11 }
  0x31   :  { %193 = vmatprep.subr.mxu0 %v285_v0 }
  0x32   :  { %194 = vmatpush3.msra.mxu0 %v46_v12 }
  0x33   :  { %195 = vmatprep.subr.mxu0 %v285_v0 }
  0x34   :  { %196 = vmatpush3.msra.mxu0 %v45_v13 }
  0x35   :  { %197 = vmatprep.subr.mxu0 %v285_v0 }
  0x36   :  { %198 = vmatpush3.msra.mxu0 %v44_v14 }
  0x37   :  { %199 = vmatprep.subr.mxu0 %v285_v0 }
  0x38   :  { %200 = vmatpush3.msra.mxu0 %v43_v15 }
  0x39   :  { %201 = vmatprep.subr.mxu0 %v285_v0 }
  0x3a   :  { %202 = vmatpush3.msra.mxu0 %v42_v16 }
  0x3b   :  { %204 = vmatmul.mubr.f32.vlgmr.msra.gmra.mxu0 %v41_v17 }
  0xfb   :  { %v131_v19 = vpop.f32.mrf.mxu0 }
  0xfc   :  { %v132_v20 = vadd.f32 %v153_v18, %v131_v19 }
  0xfd   :  { %v205_v21 = vpop.f32.mrf.mxu0 }
  0xfe   :  { %213 = vtanh.f32 %v132_v20 }
 0x10b   :  { %v214_v22 = vpop.eup %213 }
 0x10c   :  { %136 = vst [vmem:[#allocation7] sm:$0xff] %v214_v22 }
 0x10d   :  { %266 = shalt.err (!%p263_p0)
}
 0x10e   :  { %146 = dma.vmem_to_hbm [thread:$0]  %s144_s25, 128, %s323_s3, [#allocation4]  }
 0x10f   :  { %279 = dma.done.wait [#allocation4], 128  }
 0x110   :  { %280 = vsyncadd [#allocation4], 4294967168 }
 0x111   :  { %150 = vsyncpa [#allocation3], 1 }
 0x112   :  { %151 = vsyncpa [#allocation6], 1 }
 0x113   :  { %152 = vsyncpa [#allocation4], 1 }

</bundles_post_ra>
